<compile_context>
chip_gen: v7x
topology: tpu7x:2x2x1
jax: 0.10.0
libtpu: 0.0.40
codegen_flags: <defaults>
</compile_context>

<pallas_src>
import functools

import jax
import jax.numpy as jnp
from jax.experimental import pallas as pl
from jax.experimental.pallas import tpu as pltpu

FREQ_MASK_PARAM = 10
TIME_MASK_PARAM = 30
NOISE_STD = 0.02
NUM_MASKS = 2


# ----------------------------------------------------------------------------
# Kernel body (shared by both layouts and both noise paths)
# ----------------------------------------------------------------------------
def _specaug_kernel(noise_std, use_hw_prng, *refs):
    """o = (x * keep_rows) * keep_cols + N(0,1) * noise_std

    use_hw_prng=True : refs = (seed_ref[SMEM], kf_ref, kt_ref, x_ref, o_ref)
                       noise generated in-kernel with the TPU hardware PRNG.
    use_hw_prng=False: refs = (kf_ref, kt_ref, x_ref, noise_ref, o_ref)
                       noise streamed in from HBM (portable fallback).
    """
    if use_hw_prng:
        seed_ref, kf_ref, kt_ref, x_ref, o_ref = refs
    else:
        kf_ref, kt_ref, x_ref, n_ref, o_ref = refs

    x = x_ref[...]
    # Two broadcast multiplies; no (rows, lanes) keep temporary is materialised.
    masked = (x * kf_ref[...]) * kt_ref[...]

    if use_hw_prng:
        # Multi-word seeding (base seed + both tile coordinates) so adjacent
        # tiles get decorrelated streams.
        pltpu.prng_seed(seed_ref[0], pl.program_id(0), pl.program_id(1))
        noise = pltpu.stateful_normal(x.shape, jnp.float32)
    else:
        noise = n_ref[...].astype(jnp.float32)

    # Generate/scale noise in f32, cast once (better tail precision for bf16).
    o_ref[...] = masked + (noise * jnp.float32(noise_std)).astype(x.dtype)


# ----------------------------------------------------------------------------
# Band sampling (torchaudio mask_along_axis semantics) — tiny scalar glue
# ----------------------------------------------------------------------------
def _sample_band(key, axis_size, mask_param):
    """torchaudio mask_along_axis sampling; band width clamped to the axis size
    so mask_param > axis_size (e.g. time_mask_param=30, T=16) stays in range.
    (Documented deviation from torchaudio in that regime.)"""
    k1, k2 = jax.random.split(key)
    value = jax.random.uniform(k1, (), jnp.float32) * mask_param
    value = jnp.minimum(value, jnp.float32(axis_size))
    min_value = jax.random.uniform(k2, (), jnp.float32) * (axis_size - value)
    start = jnp.floor(min_value).astype(jnp.int32)
    end = jnp.floor(min_value + value).astype(jnp.int32)
    return start, end


def _keep_vector(size, bands, dtype):
    """0/1 vector: 1 where the index is outside every (start, end) band."""
    idx = jnp.arange(size, dtype=jnp.int32)
    keep = jnp.ones((size,), dtype)
    for start, end in bands:
        keep = keep * (~((idx >= start) & (idx < end))).astype(dtype)
    return keep


# ----------------------------------------------------------------------------
# Tile-size policies (soft ~4 MiB per-buffer budget; grids use pl.cdiv so the
# tile never has to divide the extent — Pallas handles ragged edge blocks).
# ----------------------------------------------------------------------------
def _choose_lane_tile(rows, lanes, itemsize, budget_bytes=4 << 20):
    """Largest 128-multiple lane tile (<= lanes) within the per-buffer budget."""
    tile = 128
    for cand in (256, 512, 1024, 2048, 4096):
        if cand <= lanes and rows * cand * itemsize <= budget_bytes:
            tile = cand
    return tile


def _choose_row_tile(rows, lanes, itemsize, budget_bytes=4 << 20):
    """Row (sublane) tile: full extent if it fits, else a multiple of 8."""
    if rows * lanes * itemsize <= budget_bytes:
        return rows
    per_row = max(1, lanes * itemsize)
    tile = max(8, (budget_bytes // per_row) // 8 * 8)
    return int(min(tile, rows))


# ----------------------------------------------------------------------------
# Wrapper
# ----------------------------------------------------------------------------
def spec_augment(spec, key, *, use_hw_prng=None):
    """spec: (B, C, F, T) float array.  Returns the augmented spectrogram."""
    B, C, F, T = spec.shape
    dtype = spec.dtype
    itemsize = dtype.itemsize
    if use_hw_prng is None:
        # TPU hardware PRNG only lowers on TPU; fall back elsewhere (CPU /
        # interpret) to an externally generated noise tensor.
        use_hw_prng = jax.default_backend() == "tpu"

    # --- sample mask bands + seeds (tiny scalar work, outside the kernel) ----
    keys = jax.random.split(key, 2 * NUM_MASKS + 2)
    f_bands = [_sample_band(keys[2 * i], F, FREQ_MASK_PARAM) for i in range(NUM_MASKS)]
    t_bands = [_sample_band(keys[2 * i + 1], T, TIME_MASK_PARAM) for i in range(NUM_MASKS)]
    keep_f = _keep_vector(F, f_bands, dtype)          # (F,)
    keep_t = _keep_vector(T, t_bands, dtype)          # (T,)

    # --- pick a lane-dense 2-D view + tiling ----------------------------------
    if T >= 128:
        # Lane axis = T, sublane axis = full C*F.
        rows = C * F
        x2 = spec.reshape(B, rows, T)
        lane_tile = _choose_lane_tile(rows, T, itemsize)
        grid = (B, pl.cdiv(T, lane_tile))
        kf = jnp.tile(keep_f, C).reshape(rows, 1)               # keep over (c,f) rows
        kt = keep_t.reshape(1, T)                               # keep over time cols
        x_spec = pl.BlockSpec((None, rows, lane_tile), lambda b, t: (b, 0, t))
        kf_spec = pl.BlockSpec((rows, 1), lambda b, t: (0, 0))
        kt_spec = pl.BlockSpec((1, lane_tile), lambda b, t: (0, t))
        out_view_shape = (B, rows, T)
    else:
        # Short T: lane axis = F*T (lane-dense output blocks, no vst.msk).
        rows, lanes = B * C, F * T
        x2 = spec.reshape(rows, lanes)
        row_tile = _choose_row_tile(rows, lanes, itemsize)
        grid = (pl.cdiv(rows, row_tile), 1)
        kf = jnp.ones((1, 1), dtype)                            # rows all kept
        kt = (keep_f[:, None] * keep_t[None, :]).reshape(1, lanes)
        x_spec = pl.BlockSpec((row_tile, lanes), lambda i, j: (i, 0))
        kf_spec = pl.BlockSpec((1, 1), lambda i, j: (0, 0))
        kt_spec = pl.BlockSpec((1, lanes), lambda i, j: (0, 0))
        out_view_shape = (rows, lanes)

    nelem = B * C * F * T
    kernel = functools.partial(_specaug_kernel, NOISE_STD, use_hw_prng)

    if use_hw_prng:
        seed = jax.random.randint(keys[-1], (1,), 0, jnp.iinfo(jnp.int32).max,
                                  dtype=jnp.int32)
        args = (seed, kf, kt, x2)
        in_specs = [pl.BlockSpec(memory_space=pltpu.SMEM),      # seed (scalar)
                    kf_spec, kt_spec, x_spec]
        bytes_accessed = 2 * nelem * itemsize                   # read x + write o
        transcendentals = 3 * nelem                             # log/sqrt/cos per elem
    else:
        noise = jax.random.normal(keys[-2], x2.shape, jnp.float32)
        args = (kf, kt, x2, noise)
        in_specs = [kf_spec, kt_spec, x_spec, x_spec]
        bytes_accessed = 2 * nelem * itemsize + 4 * nelem       # + noise read
        transcendentals = 0

    # TODO(synk): on v7x, switch the leading grid axis to pltpu.CORE_PARALLEL
    # (or an explicit core_map over the 2-TC mesh) to engage both TensorCores;
    # kept plain "parallel" here for portability across v5e/v6e/v7x.
    out = pl.pallas_call(
        kernel,
        out_shape=jax.ShapeDtypeStruct(out_view_shape, dtype),
        grid=grid,
        in_specs=in_specs,
        out_specs=x_spec,
        compiler_params=pltpu.CompilerParams(
            dimension_semantics=("parallel", "parallel"),
            vmem_limit_bytes=32 * 1024 * 1024),
        cost_estimate=pl.CostEstimate(
            flops=4 * nelem,
            transcendentals=transcendentals,
            bytes_accessed=bytes_accessed),
    )(*args)
    return out.reshape(B, C, F, T)


if __name__ == "__main__":
    key = jax.random.PRNGKey(0)
    k_spec, k_aug = jax.random.split(key)

    B, C, F, T = 2, 4, 16, 16
    spec = jax.random.normal(k_spec, (B, C, F, T), jnp.float32)

    out = spec_augment(spec, k_aug)
    out = jax.block_until_ready(out)

    assert out.shape == spec.shape and out.dtype == spec.dtype
    assert bool(jnp.all(jnp.isfinite(out)))
    print("KERNEL_OK")
</pallas_src>

<mosaic_0001>
module attributes {stable_mosaic.version = 11 : i64} {
  func.func @_specaug_kernel(%arg0: i32, %arg1: i32, %arg2: memref<1x1xf32, #tpu.memory_space<vmem>>, %arg3: memref<1x256xf32, #tpu.memory_space<vmem>>, %arg4: memref<8x256xf32, #tpu.memory_space<vmem>>, %arg5: memref<8x256xf32, #tpu.memory_space<vmem>>, %arg6: memref<8x256xf32, #tpu.memory_space<vmem>>) attributes {dimension_semantics = [#tpu.dimension_semantics<parallel>, #tpu.dimension_semantics<parallel>], iteration_bounds = array<i64: 1, 1>, scalar_prefetch = 0 : i64, scratch_operands = 0 : i64, tpu.core_type = #tpu.core_type<tc>, window_params = [{pipeline_mode = #tpu.pipeline_mode<synchronous>, transform_indices = @transform_0, window_bounds = array<i64: 1, 1>}, {pipeline_mode = #tpu.pipeline_mode<synchronous>, transform_indices = @transform_1, window_bounds = array<i64: 1, 256>}, {transform_indices = @transform_2, window_bounds = array<i64: 8, 256>}, {transform_indices = @transform_3, window_bounds = array<i64: 8, 256>}, {transform_indices = @transform_4, window_bounds = array<i64: 8, 256>}]} {
    %c0 = arith.constant 0 : index
    %c0_0 = arith.constant 0 : index
    %0 = vector.load %arg4[%c0, %c0_0] : memref<8x256xf32, #tpu.memory_space<vmem>>, vector<8x256xf32>
    %c0_1 = arith.constant 0 : index
    %c0_2 = arith.constant 0 : index
    %1 = vector.load %arg2[%c0_1, %c0_2] : memref<1x1xf32, #tpu.memory_space<vmem>>, vector<1x1xf32>
    %2 = vector.broadcast %1 : vector<1x1xf32> to vector<8x256xf32>
    %3 = arith.mulf %0, %2 : vector<8x256xf32>
    %c0_3 = arith.constant 0 : index
    %c0_4 = arith.constant 0 : index
    %4 = vector.load %arg3[%c0_3, %c0_4] : memref<1x256xf32, #tpu.memory_space<vmem>>, vector<1x256xf32>
    %5 = vector.broadcast %4 : vector<1x256xf32> to vector<8x256xf32>
    %6 = arith.mulf %3, %5 : vector<8x256xf32>
    %c0_5 = arith.constant 0 : index
    %c0_6 = arith.constant 0 : index
    %7 = vector.load %arg5[%c0_5, %c0_6] : memref<8x256xf32, #tpu.memory_space<vmem>>, vector<8x256xf32>
    %cst = arith.constant 2.000000e-02 : f32
    %8 = vector.broadcast %cst : f32 to vector<8x256xf32>
    %9 = arith.mulf %7, %8 : vector<8x256xf32>
    %10 = arith.addf %6, %9 : vector<8x256xf32>
    %c0_7 = arith.constant 0 : index
    %c0_8 = arith.constant 0 : index
    %11 = vector.load %arg6[%c0_7, %c0_8] : memref<8x256xf32, #tpu.memory_space<vmem>>, vector<8x256xf32>
    tpu.vector_store %arg6[%c0_7, %c0_8], %10 {strides = array<i32>} : memref<8x256xf32, #tpu.memory_space<vmem>>, vector<8x256xf32>,
    return
  }
  func.func @transform_0(%arg0: i32, %arg1: i32) -> (i32, i32) {
    %c0_i32 = arith.constant 0 : i32
    %c0_i32_0 = arith.constant 0 : i32
    %c0_i32_1 = arith.constant 0 : i32
    return %c0_i32, %c0_i32_0 : i32, i32
  }
  func.func @transform_1(%arg0: i32, %arg1: i32) -> (i32, i32) {
    %c0_i32 = arith.constant 0 : i32
    %c0_i32_0 = arith.constant 0 : i32
    %c0_i32_1 = arith.constant 0 : i32
    return %c0_i32, %c0_i32_0 : i32, i32
  }
  func.func @transform_2(%arg0: i32, %arg1: i32) -> (i32, i32) {
    %c0_i32 = arith.constant 0 : i32
    %c0_i32_0 = arith.constant 0 : i32
    return %arg0, %c0_i32 : i32, i32
  }
  func.func @transform_3(%arg0: i32, %arg1: i32) -> (i32, i32) {
    %c0_i32 = arith.constant 0 : i32
    %c0_i32_0 = arith.constant 0 : i32
    return %arg0, %c0_i32 : i32, i32
  }
  func.func @transform_4(%arg0: i32, %arg1: i32) -> (i32, i32) {
    %c0_i32 = arith.constant 0 : i32
    %c0_i32_0 = arith.constant 0 : i32
    return %arg0, %c0_i32 : i32, i32
  }
}

</mosaic_0001>

<bundles_post_ra>
// kernel: tpu_custom_call.1
= control target key start
LH: loop header
LB: loop body
LE: loop exit
PB: predicated region body
PF: predicated region fallthrough
CT: control target
= control target key end

     0   :  { %s245_s0 = inlined_call_operand.<no memory space> [shape: f32[1,1], index: 0, kind: input, shape index: {}]   ;;  %s246_s1 = inlined_call_operand.vmem [shape: f32[1,256], index: 1, kind: input, shape index: {}]   ;;  %s247_s2 = inlined_call_operand.hbm [shape: f32[8,256], index: 2, kind: input, shape index: {}]   ;;  %s248_s3 = inlined_call_operand.hbm [shape: f32[8,256], index: 3, kind: input, shape index: {}]   ;;  %s249_s4 = inlined_call_operand.hbm [shape: f32[8,256], index: 4, kind: output, shape index: {}]  }
   0x1   :  { %v9_v0 = vstv %s245_s0 }
   0x2   :  { %10 = vst [vmem:[#allocation2] sm:$0x1] %v9_v0 }
   0x3   :  { %11 = vsyncpa [#allocation4], 0 }
   0x4   :  { %12 = vsyncpa [#allocation7], 0 }
   0x5   :  { %13 = vsyncpa [#allocation5], 0  ;;  %s174_s17 = smov [#allocation3]   ;;  %s175_s19 = smov [#allocation6]  }
   0x6   :  { %s24_s18 = sshll.u32 %s174_s17, 4  ;;  %s34_s20 = sshll.u32 %s175_s19, 4  ;;  %s25_s18 = int_to_ptr.vmem [resolvable:$true] %s24_s18  ;;  %s35_s20 = int_to_ptr.vmem [resolvable:$true] %s34_s20 }
   0x7   :  { %s102_s23 = scalar_lea.hbm %s247_s2, 256 }
   0x8   :  { %p103_p0 = scmp.ne.s32.totalorder %s247_s2, %s102_s23  ;;  %p106_p1 = scmp.lt.u32.totalorder %s102_s23, %s247_s2 }
   0xa   :  { %p108_p2 = pnand %p106_p1, %p103_p0 }
   0xc   :  { %111 = shalt.err (!%p108_p2)
}
   0xd   :  { %s112_s27 = scalar_lea.vmem %s25_s18, 256  ;;  %p117_p4 = scmp.lt.s32.totalorder %s25_s18, %s25_s18 }
   0xe   :  { %p113_p3 = scmp.ne.s32.totalorder %s25_s18, %s112_s27  ;;  %p118_p5 = scmp.lt.s32.totalorder %s112_s27, %s112_s27 }
  0x10   :  { %p119_p6 = por %p118_p5, %p117_p4 }
  0x12   :  { %p120_p7 = pnand %p119_p6, %p113_p3 }
  0x14   :  { %123 = shalt.err (!%p120_p7)
}
  0x15   :  { %27 = dma.hbm_to_vmem [thread:$0]  %s247_s2, 256, %s25_s18, [#allocation4]  }
  0x16   :  { %s124_s6 = scalar_lea.hbm %s248_s3, 256 }
  0x17   :  { %p125_p8 = scmp.ne.s32.totalorder %s248_s3, %s124_s6  ;;  %p128_p9 = scmp.lt.u32.totalorder %s124_s6, %s248_s3 }
  0x19   :  { %p130_p10 = pnand %p128_p9, %p125_p8 }
  0x1b   :  { %133 = shalt.err (!%p130_p10)
}
  0x1c   :  { %s134_s11 = scalar_lea.vmem %s35_s20, 256  ;;  %p139_p12 = scmp.lt.s32.totalorder %s35_s20, %s35_s20 }
  0x1d   :  { %p135_p11 = scmp.ne.s32.totalorder %s35_s20, %s134_s11  ;;  %p140_p13 = scmp.lt.s32.totalorder %s134_s11, %s134_s11 }
  0x1f   :  { %p141_p0 = por %p140_p13, %p139_p12 }
  0x21   :  { %p142_p1 = pnand %p141_p0, %p135_p11 }
  0x23   :  { %145 = shalt.err (!%p142_p1)
}
  0x24   :  { %37 = dma.hbm_to_vmem [thread:$0]  %s248_s3, 256, %s35_s20, [#allocation7]  }
  0x25   :  { %168 = dma.done.wait [#allocation4], 256  }
  0x26   :  { %169 = vsyncadd [#allocation4], 4294967040 }
  0x27   :  { %170 = dma.done.wait [#allocation7], 256  }
  0x28   :  { %171 = vsyncadd [#allocation7], 4294967040  ;;  %v176_v1 = vmov 0   ;;  %v96_v2 = vld [vmem:[#allocation2] ss:$0 sm:$0xff]  ;;  %v60_v3 = vlaneseq  ;;  %v72_v8 = vld [vmem:[#allocation6] sm:$0xff] }
  0x29   :  { %101 = vset.pattern.permute.xlu0 %v176_v1  ;;  %v58_v7 = vld [vmem:[%s246_s1] sm:$0x3]  ;;  %v45_v11 = vld [vmem:[#allocation3 + $0x8] sm:$0xff]  ;;  %v74_v15 = vmul.f32 0.02, %v72_v8  ;;  %s177_s3 = smov [#allocation8]  }
  0x2a   :  { %53 = vperm.xlu0 %101, %v96_v2   ;;  %v61_v4 = vshrl.u32 %v60_v3, 7  ;;  %v73_v9 = vld [vmem:[#allocation6 + $0x8] sm:$0xff]  ;;  %v44_v10 = vld [vmem:[#allocation3] sm:$0xff]  ;;  %s86_s15 = sshll.u32 %s177_s3, 4  ;;  %s87_s15 = int_to_ptr.vmem [resolvable:$true] %s86_s15 }
  0x2b   :  { %v75_v16 = vmul.f32 0.02, %v73_v9  ;;  %s146_s1 = scalar_lea.vmem %s87_s15, 256  ;;  %p151_p3 = scmp.lt.s32.totalorder %s87_s15, %s87_s15 }
  0x2c   :  { %v62_v5 = vsub.s32 0, %v61_v4  ;;  %v66_v6 = vsub.s32 1, %v61_v4  ;;  %p147_p2 = scmp.ne.s32.totalorder %s87_s15, %s146_s1  ;;  %p152_p4 = scmp.lt.s32.totalorder %s146_s1, %s146_s1 }
  0x2e   :  { %v63_v12 = vrot.slane %v58_v7, %v62_v5  ;;  %v67_v13 = vrot.slane %v58_v7, %v66_v6  ;;  %p153_p5 = por %p152_p4, %p151_p3 }
  0x30   :  { %p154_p6 = pnand %p153_p5, %p147_p2 }
  0xa9   :  { %v54_v14 = vpop.permute.xlu0 %53 }
  0xaa   :  { %v56_v17 = vmul.f32 %v54_v14, %v44_v10  ;;  %v57_v18 = vmul.f32 %v54_v14, %v45_v11 }
  0xac   :  { %v70_v19 = vmul.f32 %v63_v12, %v56_v17  ;;  %v71_v20 = vmul.f32 %v67_v13, %v57_v18 }
  0xae   :  { %v76_v21 = vadd.f32 %v74_v15, %v70_v19  ;;  %v77_v22 = vadd.f32 %v75_v16, %v71_v20 }
  0xb0   :  { %78 = vst [vmem:[#allocation8] sm:$0xff] %v76_v21  ;;  %79 = vst [vmem:[#allocation8 + $0x8] sm:$0xff] %v77_v22 }
  0xb1   :  { %157 = shalt.err (!%p154_p6)
}
  0xb2   :  { %s158_s18 = scalar_lea.hbm %s249_s4, 256 }
  0xb3   :  { %p159_p7 = scmp.ne.s32.totalorder %s249_s4, %s158_s18  ;;  %p162_p8 = scmp.lt.u32.totalorder %s158_s18, %s249_s4 }
  0xb5   :  { %p164_p9 = pnand %p162_p8, %p159_p7 }
  0xb7   :  { %167 = shalt.err (!%p164_p9)
}
  0xb8   :  { %89 = dma.vmem_to_hbm [thread:$0]  %s87_s15, 256, %s249_s4, [#allocation5]  }
  0xb9   :  { %172 = dma.done.wait [#allocation5], 256  }
  0xba   :  { %173 = vsyncadd [#allocation5], 4294967040 }
  0xbb   :  { %93 = vsyncpa [#allocation4], 1 }
  0xbc   :  { %94 = vsyncpa [#allocation7], 1 }
  0xbd   :  { %95 = vsyncpa [#allocation5], 1 }

</bundles_post_ra>
